<compile_context>
chip_gen: v6e
topology: v6e:2x2x1
jax: 0.10.0
libtpu: 0.0.40
codegen_flags: <defaults>
</compile_context>

<pallas_src>
import jax
import jax.numpy as jnp
from jax.experimental import pallas as pl
from jax.experimental.pallas import tpu as pltpu

D_IN, D_HID, D_OUT = 10, 10, 5
MAX_TILE_N = 2048


def _toy_model_kernel(x_ref, w1t_ref, b1_ref, w2t_ref, b2_ref, out_ref):
    # --- ToyModel1: ReLU(Linear(10,10)) ---
    x = x_ref[...]                                   # (TILE_N, 10), io dtype
    h = jnp.dot(x, w1t_ref[...],
                preferred_element_type=jnp.float32)  # MXU, f32 accumulate
    h = jnp.maximum(h + b1_ref[...], 0.0)            # bias (f32) + ReLU on VPU
    # --- ToyModel2: Linear(10,5) ---
    h = h.astype(w2t_ref.dtype)                      # no-op in f32 mode
    z = jnp.dot(h, w2t_ref[...],
                preferred_element_type=jnp.float32) + b2_ref[...]
    # Output last dim is 5 (<128) -> masked partial store; accepted (tiny traffic).
    out_ref[...] = z.astype(out_ref.dtype)


def prepare_params(w1, b1, w2, b2, io_dtype=jnp.float32):
    """Hoist weight transposes / bias reshapes out of the forward (call once).

    w1: (10, 10) PyTorch layout (out, in);  b1: (10,)
    w2: (5, 10)  PyTorch layout (out, in);  b2: (5,)
    io_dtype: dtype for the x/W HBM->VMEM path (f32 or bf16); biases stay f32.
    """
    w1t = jnp.transpose(w1).astype(io_dtype)        # (in=10, out=10)
    w2t = jnp.transpose(w2).astype(io_dtype)        # (in=10, out=5)
    b1r = b1.reshape(1, -1).astype(jnp.float32)     # (1, 10)
    b2r = b2.reshape(1, -1).astype(jnp.float32)     # (1, 5)
    return w1t, b1r, w2t, b2r


def _round_up(n, m):
    return ((n + m - 1) // m) * m


@jax.jit
def _forward(xs, w1t, b1r, w2t, b2r):
    n = xs.shape[0]
    io_dtype = w1t.dtype
    # f32 packs 8 rows per vreg sublane group; bf16 packs 16.
    sublane = 16 if io_dtype == jnp.bfloat16 else 8

    if n <= MAX_TILE_N:
        tile_n = _round_up(max(n, sublane), sublane)   # single tile, sublane-aligned
    else:
        tile_n = MAX_TILE_N

    n_pad = _round_up(n, tile_n)
    if n_pad != n:
        xs = jnp.pad(xs, ((0, n_pad - n), (0, 0)))
    xs = xs.astype(io_dtype)

    grid = (n_pad // tile_n,)
    out = pl.pallas_call(
        _toy_model_kernel,
        out_shape=jax.ShapeDtypeStruct((n_pad, D_OUT), jnp.float32),
        grid=grid,
        in_specs=[
            # Batch-tiled input: new block each grid step (pipelined DMA).
            pl.BlockSpec((tile_n, D_IN), lambda i: (i, 0)),
            # Weights / biases: constant block index -> VMEM-resident across steps.
            pl.BlockSpec((D_IN, D_HID), lambda i: (0, 0)),
            pl.BlockSpec((1, D_HID), lambda i: (0, 0)),
            pl.BlockSpec((D_HID, D_OUT), lambda i: (0, 0)),
            pl.BlockSpec((1, D_OUT), lambda i: (0, 0)),
        ],
        out_specs=pl.BlockSpec((tile_n, D_OUT), lambda i: (i, 0)),
        compiler_params=pltpu.CompilerParams(
            dimension_semantics=("parallel",),   # megacore sharding on v7x
        ),
    )(xs, w1t, b1r, w2t, b2r)
    return out[:n]


def dist_toy_model_forward(xs, w1t, b1r, w2t, b2r, split_size=2):
    """Pallas equivalent of DistToyModel.forward.

    `split_size` is kept for API parity only: chunk-then-concat over dim 0 is
    a no-op for this per-row pipeline, so the kernel processes the full batch
    (tiled internally over the batch grid) with an identical result.
    """
    del split_size  # RPC pipelining / chunking detail only.
    return _forward(xs, w1t, b1r, w2t, b2r)


def _reference(xs, w1, b1, w2, b2):
    h = jnp.maximum(xs @ w1.T + b1, 0.0)
    return h @ w2.T + b2


if __name__ == "__main__":
    key = jax.random.PRNGKey(0)
    k_x, k_w1, k_b1, k_w2, k_b2 = jax.random.split(key, 5)

    N = 8
    split_size = 2

    xs = jax.random.normal(k_x, (N, D_IN), dtype=jnp.float32)
    # Deterministic parameters (shapes of nn.Linear(10,10) / nn.Linear(10,5)).
    w1 = jax.random.normal(k_w1, (D_HID, D_IN), dtype=jnp.float32) * 0.1
    b1 = jax.random.normal(k_b1, (D_HID,), dtype=jnp.float32) * 0.1
    w2 = jax.random.normal(k_w2, (D_OUT, D_HID), dtype=jnp.float32) * 0.1
    b2 = jax.random.normal(k_b2, (D_OUT,), dtype=jnp.float32) * 0.1

    ref = _reference(xs, w1, b1, w2, b2)

    # --- f32 I/O path (exact) ---
    params_f32 = prepare_params(w1, b1, w2, b2, io_dtype=jnp.float32)
    out = jax.block_until_ready(
        dist_toy_model_forward(xs, *params_f32, split_size=split_size))
    assert out.shape == (N, D_OUT)
    assert jnp.allclose(out, ref, atol=1e-5, rtol=1e-5)

    # --- bf16 I/O path (halves HBM traffic; f32 accumulation) ---
    params_bf16 = prepare_params(w1, b1, w2, b2, io_dtype=jnp.bfloat16)
    out_bf = jax.block_until_ready(
        dist_toy_model_forward(xs, *params_bf16, split_size=split_size))
    assert jnp.allclose(out_bf, ref, atol=3e-2, rtol=3e-2)

    # --- multi-tile + remainder path (grid of 3, padded) ---
    N_big = 4100  # not a multiple of the 2048-row tile -> exercises padding + grid
    xs_big = jax.random.normal(k_x, (N_big, D_IN), dtype=jnp.float32)
    ref_big = _reference(xs_big, w1, b1, w2, b2)
    out_big = jax.block_until_ready(dist_toy_model_forward(xs_big, *params_f32))
    assert out_big.shape == (N_big, D_OUT)
    assert jnp.allclose(out_big, ref_big, atol=1e-4, rtol=1e-4)

    print("KERNEL_OK")
</pallas_src>

<mosaic_0001>
module attributes {stable_mosaic.version = 11 : i64} {
  func.func @_toy_model_kernel(%arg0: i32, %arg1: memref<8x10xf32, #tpu.memory_space<vmem>>, %arg2: memref<10x10xf32, #tpu.memory_space<vmem>>, %arg3: memref<1x10xf32, #tpu.memory_space<vmem>>, %arg4: memref<10x5xf32, #tpu.memory_space<vmem>>, %arg5: memref<1x5xf32, #tpu.memory_space<vmem>>, %arg6: memref<8x5xf32, #tpu.memory_space<vmem>>) attributes {dimension_semantics = [#tpu.dimension_semantics<parallel>], iteration_bounds = array<i64: 1>, scalar_prefetch = 0 : i64, scratch_operands = 0 : i64, tpu.core_type = #tpu.core_type<tc>, window_params = [{transform_indices = @transform_0, window_bounds = array<i64: 8, 10>}, {pipeline_mode = #tpu.pipeline_mode<synchronous>, transform_indices = @transform_1, window_bounds = array<i64: 10, 10>}, {pipeline_mode = #tpu.pipeline_mode<synchronous>, transform_indices = @transform_2, window_bounds = array<i64: 1, 10>}, {pipeline_mode = #tpu.pipeline_mode<synchronous>, transform_indices = @transform_3, window_bounds = array<i64: 10, 5>}, {pipeline_mode = #tpu.pipeline_mode<synchronous>, transform_indices = @transform_4, window_bounds = array<i64: 1, 5>}, {transform_indices = @transform_5, window_bounds = array<i64: 8, 5>}]} {
    %c0 = arith.constant 0 : index
    %c0_0 = arith.constant 0 : index
    %0 = vector.load %arg1[%c0, %c0_0] : memref<8x10xf32, #tpu.memory_space<vmem>>, vector<8x10xf32>
    %c0_1 = arith.constant 0 : index
    %c0_2 = arith.constant 0 : index
    %1 = vector.load %arg2[%c0_1, %c0_2] : memref<10x10xf32, #tpu.memory_space<vmem>>, vector<10x10xf32>
    %cst = arith.constant dense<0.000000e+00> : vector<8x10xf32>
    %2 = tpu.matmul %0, %1, %cst {dimension_numbers = #tpu.dot_dimension_numbers<[1], [0], [0], [1], [0, 0, 1, 1], [], []>} : vector<8x10xf32>, vector<10x10xf32>, vector<8x10xf32> -> vector<8x10xf32>
    %c0_3 = arith.constant 0 : index
    %c0_4 = arith.constant 0 : index
    %3 = vector.load %arg3[%c0_3, %c0_4] : memref<1x10xf32, #tpu.memory_space<vmem>>, vector<1x10xf32>
    %4 = vector.broadcast %3 : vector<1x10xf32> to vector<8x10xf32>
    %5 = arith.addf %2, %4 : vector<8x10xf32>
    %cst_5 = arith.constant 0.000000e+00 : f32
    %6 = vector.broadcast %cst_5 : f32 to vector<8x10xf32>
    %7 = arith.maximumf %5, %6 : vector<8x10xf32>
    %c0_6 = arith.constant 0 : index
    %c0_7 = arith.constant 0 : index
    %8 = vector.load %arg4[%c0_6, %c0_7] : memref<10x5xf32, #tpu.memory_space<vmem>>, vector<10x5xf32>
    %cst_8 = arith.constant dense<0.000000e+00> : vector<8x5xf32>
    %9 = tpu.matmul %7, %8, %cst_8 {dimension_numbers = #tpu.dot_dimension_numbers<[1], [0], [0], [1], [0, 0, 1, 1], [], []>} : vector<8x10xf32>, vector<10x5xf32>, vector<8x5xf32> -> vector<8x5xf32>
    %c0_9 = arith.constant 0 : index
    %c0_10 = arith.constant 0 : index
    %10 = vector.load %arg5[%c0_9, %c0_10] : memref<1x5xf32, #tpu.memory_space<vmem>>, vector<1x5xf32>
    %11 = vector.broadcast %10 : vector<1x5xf32> to vector<8x5xf32>
    %12 = arith.addf %9, %11 : vector<8x5xf32>
    %c0_11 = arith.constant 0 : index
    %c0_12 = arith.constant 0 : index
    %13 = vector.load %arg6[%c0_11, %c0_12] : memref<8x5xf32, #tpu.memory_space<vmem>>, vector<8x5xf32>
    tpu.vector_store %arg6[%c0_11, %c0_12], %12 {strides = array<i32>} : memref<8x5xf32, #tpu.memory_space<vmem>>, vector<8x5xf32>,
    return
  }
  func.func @transform_0(%arg0: i32) -> (i32, i32) {
    %c0_i32 = arith.constant 0 : i32
    %c0_i32_0 = arith.constant 0 : i32
    return %arg0, %c0_i32 : i32, i32
  }
  func.func @transform_1(%arg0: i32) -> (i32, i32) {
    %c0_i32 = arith.constant 0 : i32
    %c0_i32_0 = arith.constant 0 : i32
    %c0_i32_1 = arith.constant 0 : i32
    return %c0_i32, %c0_i32_0 : i32, i32
  }
  func.func @transform_2(%arg0: i32) -> (i32, i32) {
    %c0_i32 = arith.constant 0 : i32
    %c0_i32_0 = arith.constant 0 : i32
    %c0_i32_1 = arith.constant 0 : i32
    return %c0_i32, %c0_i32_0 : i32, i32
  }
  func.func @transform_3(%arg0: i32) -> (i32, i32) {
    %c0_i32 = arith.constant 0 : i32
    %c0_i32_0 = arith.constant 0 : i32
    %c0_i32_1 = arith.constant 0 : i32
    return %c0_i32, %c0_i32_0 : i32, i32
  }
  func.func @transform_4(%arg0: i32) -> (i32, i32) {
    %c0_i32 = arith.constant 0 : i32
    %c0_i32_0 = arith.constant 0 : i32
    %c0_i32_1 = arith.constant 0 : i32
    return %c0_i32, %c0_i32_0 : i32, i32
  }
  func.func @transform_5(%arg0: i32) -> (i32, i32) {
    %c0_i32 = arith.constant 0 : i32
    %c0_i32_0 = arith.constant 0 : i32
    return %arg0, %c0_i32 : i32, i32
  }
}

</mosaic_0001>

<bundles_post_ra>
// kernel: _forward.1
= control target key start
LH: loop header
LB: loop body
LE: loop exit
PB: predicated region body
PF: predicated region fallthrough
CT: control target
= control target key end

     0   :  { %vm35_vm0 = vcmask 1041408   ;;  %v262_v1 = vmov 0.0   ;;  %vm263_vm1 = vmmov 0   ;;  %s323_s0 = inlined_call_operand.vmem [shape: f32[8,10], index: 0, kind: input, shape index: {}]   ;;  %s324_s1 = inlined_call_operand.vmem [shape: f32[10,10], index: 1, kind: input, shape index: {}]   ;;  %s325_s2 = inlined_call_operand.vmem [shape: f32[1,10], index: 2, kind: input, shape index: {}]   ;;  %s326_s3 = inlined_call_operand.vmem [shape: f32[10,5], index: 3, kind: input, shape index: {}]   ;;  %s327_s4 = inlined_call_operand.vmem [shape: f32[1,5], index: 4, kind: input, shape index: {}]   ;;  %s328_s5 = inlined_call_operand.hbm [shape: f32[8,5], index: 5, kind: output, shape index: {}]  }
   0x1   :  { %v23_v0 = vld [vmem:[%s324_s1 + $0x8] sm:$0x3]  ;;  %223 = vmatprep.subr.mxu0 %v262_v1  ;;  %v22_v2 = vld [vmem:[%s324_s1] sm:$0xff]  ;;  %227 = vmatprep.mubr.msk.f32.mxu0 %vm263_vm1, %v262_v1 }
   0x2   :  { %10 = vsyncpa [#allocation3], 0  ;;  %224 = vmatpush3.msk.msra.mxu0 %vm35_vm0, %v23_v0  ;;  %v21_v3 = vld [vmem:[%s323_s0] sm:$0xff]  ;;  %vm31_vm2 = vcmask 80896   ;;  %230 = vmatprep.subr.mxu1 %v262_v1  ;;  %v111_v4 = vld [vmem:[%s326_s3 + $0x8] sm:$0x3] }
   0x3   :  { %225 = vmatprep.subr.mxu0 %v262_v1  ;;  %234 = vmatprep.mubr.msk.f32.mxu1 %vm263_vm1, %v262_v1  ;;  %v110_v5 = vld [vmem:[%s326_s3] sm:$0xff]  ;;  %s264_s30 = smov [#allocation2]   ;;  %vm195_vm3 = vcmask 39936  }
   0x4   :  { %226 = vmatpush3.msra.mxu0 %v22_v2  ;;  %231 = vmatpush3.msk.msra.mxu1 %vm35_vm0, %v111_v4  ;;  %v211_v6 = vld [vmem:[%s325_s2] ss:$0 sm:$0xff]  ;;  %s203_s6 = sshll.u32 %s264_s30, 4  ;;  %s204_s6 = int_to_ptr.vmem [resolvable:$true] %s203_s6 }
   0x5   :  { %228 = vmatmul.mubr.msk.f32.vlgmr.msra.gmra.mxu0 %vm31_vm2, %v21_v3  ;;  %232 = vmatprep.subr.mxu1 %v262_v1  ;;  %v214_v11 = vld [vmem:[%s327_s4] ss:$0 sm:$0xff]  ;;  %s240_s3 = scalar_lea.vmem %s204_s6, 128  ;;  %p245_p1 = scmp.lt.s32.totalorder %s204_s6, %s204_s6 }
   0x6   :  { %233 = vmatpush3.msra.mxu1 %v110_v5  ;;  %p241_p0 = scmp.ne.s32.totalorder %s204_s6, %s240_s3  ;;  %p246_p2 = scmp.lt.s32.totalorder %s240_s3, %s240_s3 }
   0x8   :  { %p247_p3 = por %p246_p2, %p245_p1 }
   0xa   :  { %p248_p4 = pnand %p247_p3, %p241_p0 }
  0xc5   :  { %v105_v7 = vpop.f32.mrf.mxu0 }
  0xc6   :  { %v106_v8 = vadd.f32 %v211_v6, %v105_v7 }
  0xc7   :  { %v229_v9 = vpop.f32.mrf.mxu0 }
  0xc8   :  { %v109_v10 = vmax.f32 %v106_v8, 0.0 }
  0xca   :  { %235 = vmatmul.mubr.msk.f32.vlgmr.msra.gmra.mxu1 %vm31_vm2, %v109_v10 }
 0x18a   :  { %v191_v12 = vpop.f32.mrf.mxu1 }
 0x18b   :  { %v192_v13 = vadd.f32 %v214_v11, %v191_v12 }
 0x18c   :  { %v236_v14 = vpop.f32.mrf.mxu1 }
 0x18d   :  { %196 = vst.msk [vmem:[#allocation2] sm:$0xff] %vm195_vm3, %v192_v13 }
 0x18e   :  { %251 = shalt.err (!%p248_p4)
}
 0x18f   :  { %206 = dma.vmem_to_hbm [thread:$0]  %s204_s6, 128, %s328_s5, [#allocation3]  }
 0x190   :  { %260 = dma.done.wait [#allocation3], 128  }
 0x191   :  { %261 = vsyncadd [#allocation3], 4294967168 }
 0x192   :  { %210 = vsyncpa [#allocation3], 1 }

</bundles_post_ra>
